<compile_context>
chip_gen: v5e
topology: v5e:2x2
jax: 0.10.0
libtpu: 0.0.40
codegen_flags: <defaults>
</compile_context>

<pallas_src>
import functools

import jax
import jax.numpy as jnp
import numpy as np
from jax.experimental import pallas as pl
from jax.experimental.pallas import tpu as pltpu


# ----------------------------------------------------------------------------
# Single-pass kernel: pooling + MLP + rescale on a (Bt, C, HW_pad) slab.
# ----------------------------------------------------------------------------
def _single_pass_kernel(hw_true, x_ref, w1t_ref, b1_ref, w2t_ref, b2_ref, o_ref):
    bt, _, hw_pad = x_ref.shape

    # f32-accumulated pooling straight off the input-dtype tile (no f32 copy).
    xs = x_ref[...]                                                # (Bt, C, HW_pad)
    avg = jnp.sum(xs, axis=2, dtype=jnp.float32) * (1.0 / hw_true)  # (Bt, C)
    if hw_pad != hw_true:
        # Padded lanes are zeros (fine for the sum); mask them out for the max.
        lane = jax.lax.broadcasted_iota(jnp.int32, xs.shape, 2)
        xs = jnp.where(lane < hw_true, xs, jnp.array(-jnp.inf, dtype=xs.dtype))
    mx = jnp.max(xs, axis=2).astype(jnp.float32)                    # (Bt, C)
    del xs  # keep the slab's live range from spanning the MLP

    # One batched MLP for both pooled vectors, lane-dense row formulation.
    pooled = jnp.concatenate([avg, mx], axis=0)                     # (2*Bt, C)
    w1t = w1t_ref[...].astype(jnp.float32)                          # (C, Cr)
    b1 = b1_ref[...]                                                # (1, Cr) f32
    w2t = w2t_ref[...].astype(jnp.float32)                          # (Cr, C)
    b2 = b2_ref[...]                                                # (1, C)  f32
    h = jnp.maximum(
        jnp.dot(pooled, w1t, preferred_element_type=jnp.float32) + b1, 0.0
    )                                                               # (2*Bt, Cr)
    o = jnp.dot(h, w2t, preferred_element_type=jnp.float32) + b2    # (2*Bt, C)

    attn = jax.nn.sigmoid(o[:bt] + o[bt:])                          # (Bt, C) f32
    scale = attn.astype(o_ref.dtype)[:, :, None]                    # (Bt, C, 1)
    # Re-read the slab from VMEM for the rescale; vld slots have slack
    # (kernel is HBM-DMA bound) and vreg pressure stays flat.
    o_ref[...] = (x_ref[...] * scale).astype(o_ref.dtype)


# ----------------------------------------------------------------------------
# Two-pass fallback kernels (large C*HW per batch): pool, then rescale.
# ----------------------------------------------------------------------------
def _pool_kernel(hw_true, thw, padded, x_ref, sum_ref, max_ref):
    j = pl.program_id(1)

    @pl.when(j == 0)
    def _():
        sum_ref[...] = jnp.zeros(sum_ref.shape, sum_ref.dtype)
        max_ref[...] = jnp.full(max_ref.shape, -jnp.inf, dtype=max_ref.dtype)

    xs = x_ref[...]                                                 # (1, C, THW)
    s = jnp.sum(xs, axis=2, dtype=jnp.float32)                      # (1, C)
    sum_ref[...] += s[None]                                         # (1, 1, C)
    if padded:
        lane = jax.lax.broadcasted_iota(jnp.int32, xs.shape, 2) + j * thw
        xs = jnp.where(lane < hw_true, xs, jnp.array(-jnp.inf, dtype=xs.dtype))
    m = jnp.max(xs, axis=2).astype(jnp.float32)                     # (1, C)
    max_ref[...] = jnp.maximum(max_ref[...], m[None])


def _rescale_kernel(x_ref, a_ref, o_ref):
    scale = a_ref[...].astype(o_ref.dtype)                          # (1, C, 1)
    o_ref[...] = (x_ref[...] * scale).astype(o_ref.dtype)


# ----------------------------------------------------------------------------
# Budget / tiling helpers.
# ----------------------------------------------------------------------------
def _vmem_budgets():
    """(per-x-tile budget bytes, vmem_limit_bytes), generation-aware."""
    vmem_cap = None
    try:
        info = pltpu.get_tpu_info()
        vmem_cap = getattr(info, "vmem_capacity_bytes", None)
    except Exception:
        vmem_cap = None
    if not vmem_cap:
        vmem_cap = 64 << 20  # conservative: assume v7x-sized VMEM
    if vmem_cap >= (128 << 20):      # v5e / v6e
        return 20 << 20, 96 << 20
    return 10 << 20, 48 << 20        # v7x (64 MiB per TC)


def _pick_bt(n, per_batch_bytes, tile_budget):
    """Largest divisor of n whose slab fits the budget, preferring an EVEN
    number of grid steps (v7x has 2 TensorCores sharing the parallel axis).
    Returns None if even a single-batch slab does not fit (-> two-pass path)."""
    fitting = [d for d in range(1, n + 1)
               if n % d == 0 and d * per_batch_bytes <= tile_budget]
    if not fitting:
        return None
    even_steps = [d for d in fitting if (n // d) % 2 == 0]
    if even_steps:
        return max(even_steps)
    multi_steps = [d for d in fitting if (n // d) >= 2]
    if multi_steps:
        return max(multi_steps)
    return max(fitting)


def _pick_thw(c, hw_pad, itemsize, tile_budget):
    """Largest multiple of 128 dividing hw_pad whose (1, C, THW) tile fits."""
    n128 = hw_pad // 128
    best = 128
    for d in range(1, n128 + 1):
        if n128 % d:
            continue
        if c * 128 * d * itemsize <= tile_budget:
            best = 128 * d
    return best


# ----------------------------------------------------------------------------
# Wrapper.
# ----------------------------------------------------------------------------
def channel_attention(x, w1, b1, w2, b2, *, donate_x=False, force_two_pass=False):
    """x: (N, C, H, W); fc1 weight (Cr, C), bias (Cr,); fc2 weight (C, Cr), bias (C,)."""
    N, C, H, W = x.shape
    Cr = w1.shape[0]
    HW = H * W
    itemsize = jnp.dtype(x.dtype).itemsize

    # Lane-dense last dim: pad HW up to a multiple of 128 (zeros).
    HW_pad = ((HW + 127) // 128) * 128
    padded = HW_pad != HW
    x_flat = x.reshape(N, C, HW)
    if padded:
        x_flat = jnp.pad(x_flat, ((0, 0), (0, 0), (0, HW_pad - HW)))

    # Layout plumbing stays in the wrapper; weights kept in f32 (they are tiny).
    w1t = jnp.asarray(w1, jnp.float32).T                 # (C, Cr)
    w2t = jnp.asarray(w2, jnp.float32).T                 # (Cr, C)
    b1r = jnp.asarray(b1, jnp.float32).reshape(1, Cr)
    b2r = jnp.asarray(b2, jnp.float32).reshape(1, C)

    tile_budget, vmem_limit = _vmem_budgets()
    per_batch = C * HW_pad * itemsize
    bt = None if force_two_pass else _pick_bt(N, per_batch, tile_budget)

    if bt is not None:
        # --------------- single pass: 1 HBM read + 1 HBM write of x ----------
        grid = (N // bt,)
        cost = pl.CostEstimate(
            flops=4 * N * C * HW_pad + 8 * N * C * Cr,
            transcendentals=2 * N * C,
            bytes_accessed=2 * N * C * HW_pad * itemsize
            + 4 * (C * Cr + C + Cr),
        )
        extra = {}
        if donate_x and not padded:
            extra["input_output_aliases"] = {0: 0}
        out = pl.pallas_call(
            functools.partial(_single_pass_kernel, HW),
            out_shape=jax.ShapeDtypeStruct((N, C, HW_pad), x.dtype),
            grid_spec=pltpu.PrefetchScalarGridSpec(
                num_scalar_prefetch=0,
                grid=grid,
                in_specs=[
                    pl.BlockSpec((bt, C, HW_pad), lambda n: (n, 0, 0)),  # x slab
                    pl.BlockSpec((C, Cr), lambda n: (0, 0)),             # fc1 W^T
                    pl.BlockSpec((1, Cr), lambda n: (0, 0)),             # fc1 b
                    pl.BlockSpec((Cr, C), lambda n: (0, 0)),             # fc2 W^T
                    pl.BlockSpec((1, C), lambda n: (0, 0)),              # fc2 b
                ],
                out_specs=pl.BlockSpec((bt, C, HW_pad), lambda n: (n, 0, 0)),
            ),
            compiler_params=pltpu.CompilerParams(
                dimension_semantics=("parallel",),
                vmem_limit_bytes=vmem_limit,
            ),
            cost_estimate=cost,
            **extra,
        )(x_flat, w1t, b1r, w2t, b2r)
    else:
        # --------------- two-pass fallback: pool -> tiny MLP -> rescale ------
        thw = _pick_thw(C, HW_pad, itemsize, tile_budget)
        n_hw = HW_pad // thw

        sums, maxes = pl.pallas_call(
            functools.partial(_pool_kernel, HW, thw, padded),
            out_shape=(
                jax.ShapeDtypeStruct((N, 1, C), jnp.float32),
                jax.ShapeDtypeStruct((N, 1, C), jnp.float32),
            ),
            grid_spec=pltpu.PrefetchScalarGridSpec(
                num_scalar_prefetch=0,
                grid=(N, n_hw),
                in_specs=[pl.BlockSpec((1, C, thw), lambda n, j: (n, 0, j))],
                out_specs=[
                    pl.BlockSpec((1, 1, C), lambda n, j: (n, 0, 0)),
                    pl.BlockSpec((1, 1, C), lambda n, j: (n, 0, 0)),
                ],
            ),
            compiler_params=pltpu.CompilerParams(
                dimension_semantics=("parallel", "arbitrary"),
                vmem_limit_bytes=vmem_limit,
            ),
        )(x_flat)

        avg = sums[:, 0, :] * (1.0 / HW)                  # (N, C) f32
        mx = maxes[:, 0, :]                               # (N, C) f32

        def _mlp(v):
            h = jnp.maximum(v @ w1t + b1r, 0.0)
            return h @ w2t + b2r

        attn = jax.nn.sigmoid(_mlp(avg) + _mlp(mx))       # (N, C) f32
        attn_r = attn.reshape(N, C, 1)

        out = pl.pallas_call(
            _rescale_kernel,
            out_shape=jax.ShapeDtypeStruct((N, C, HW_pad), x.dtype),
            grid_spec=pltpu.PrefetchScalarGridSpec(
                num_scalar_prefetch=0,
                grid=(N, n_hw),
                in_specs=[
                    pl.BlockSpec((1, C, thw), lambda n, j: (n, 0, j)),
                    pl.BlockSpec((1, C, 1), lambda n, j: (n, 0, 0)),
                ],
                out_specs=pl.BlockSpec((1, C, thw), lambda n, j: (n, 0, j)),
            ),
            compiler_params=pltpu.CompilerParams(
                dimension_semantics=("parallel", "parallel"),
                vmem_limit_bytes=vmem_limit,
            ),
        )(x_flat, attn_r)

    if padded:
        out = out[..., :HW]
    return out.reshape(N, C, H, W)


# ----------------------------------------------------------------------------
# Pure-JAX reference mirroring the PyTorch forward.
# ----------------------------------------------------------------------------
def channel_attention_ref(x, w1, b1, w2, b2):
    avg = jnp.mean(x, axis=(2, 3), keepdims=True)                  # (N, C, 1, 1)
    mx = jnp.max(jnp.max(x, axis=2, keepdims=True), axis=3, keepdims=True)

    def mlp(v):                                                    # v: (N, C, 1, 1)
        v = v[..., 0, 0]                                           # (N, C)
        h = jnp.maximum(v @ w1.T + b1, 0.0)                        # (N, Cr)
        return (h @ w2.T + b2)[..., None, None]                    # (N, C, 1, 1)

    return jax.nn.sigmoid(mlp(avg) + mlp(mx)) * x


if __name__ == "__main__":
    key = jax.random.PRNGKey(0)
    k_x, k_w1, k_b1, k_w2, k_b2 = jax.random.split(key, 5)

    N, C, H, W = 2, 32, 16, 16
    reduction = 16
    Cr = C // reduction

    x = jax.random.normal(k_x, (N, C, H, W), dtype=jnp.float32)
    # Synthetic parameters (shapes as in nn.Conv2d(..., kernel_size=1))
    w1 = jax.random.normal(k_w1, (Cr, C), dtype=jnp.float32) * 0.1   # fc1.weight[:,:,0,0]
    b1 = jax.random.normal(k_b1, (Cr,), dtype=jnp.float32) * 0.1     # fc1.bias
    w2 = jax.random.normal(k_w2, (C, Cr), dtype=jnp.float32) * 0.1   # fc2.weight[:,:,0,0]
    b2 = jax.random.normal(k_b2, (C,), dtype=jnp.float32) * 0.1      # fc2.bias

    # Main check: single-pass, HW = 256 (already lane-dense).
    y = channel_attention(x, w1, b1, w2, b2)
    jax.block_until_ready(y)
    y_ref = channel_attention_ref(x, w1, b1, w2, b2)
    np.testing.assert_allclose(np.asarray(y), np.asarray(y_ref), rtol=1e-5, atol=1e-5)

    # Lane-padding check: 7x7 -> padded to 128 lanes (masked-max path).
    x2 = jax.random.normal(k_x, (N, C, 7, 7), dtype=jnp.float32)
    y2 = channel_attention(x2, w1, b1, w2, b2)
    y2_ref = channel_attention_ref(x2, w1, b1, w2, b2)
    np.testing.assert_allclose(np.asarray(y2), np.asarray(y2_ref), rtol=1e-5, atol=1e-5)

    # Two-pass fallback check (forced) — the path used when C*HW exceeds VMEM.
    y3 = channel_attention(x2, w1, b1, w2, b2, force_two_pass=True)
    np.testing.assert_allclose(np.asarray(y3), np.asarray(y2_ref), rtol=1e-5, atol=1e-5)

    print("KERNEL_OK")
</pallas_src>

<mosaic_0001>
module attributes {stable_mosaic.version = 11 : i64} {
  func.func @_single_pass_kernel(%arg0: i32, %arg1: memref<1x32x256xf32, #tpu.memory_space<vmem>>, %arg2: memref<32x2xf32, #tpu.memory_space<vmem>>, %arg3: memref<1x2xf32, #tpu.memory_space<vmem>>, %arg4: memref<2x32xf32, #tpu.memory_space<vmem>>, %arg5: memref<1x32xf32, #tpu.memory_space<vmem>>, %arg6: memref<1x32x256xf32, #tpu.memory_space<vmem>>) attributes {dimension_semantics = [#tpu.dimension_semantics<parallel>], iteration_bounds = array<i64: 2>, scalar_prefetch = 0 : i64, scratch_operands = 0 : i64, tpu.core_type = #tpu.core_type<tc>, window_params = [{transform_indices = @transform_0, window_bounds = array<i64: 1, 32, 256>}, {pipeline_mode = #tpu.pipeline_mode<synchronous>, transform_indices = @transform_1, window_bounds = array<i64: 32, 2>}, {pipeline_mode = #tpu.pipeline_mode<synchronous>, transform_indices = @transform_2, window_bounds = array<i64: 1, 2>}, {pipeline_mode = #tpu.pipeline_mode<synchronous>, transform_indices = @transform_3, window_bounds = array<i64: 2, 32>}, {pipeline_mode = #tpu.pipeline_mode<synchronous>, transform_indices = @transform_4, window_bounds = array<i64: 1, 32>}, {transform_indices = @transform_5, window_bounds = array<i64: 1, 32, 256>}]} {
    %c0 = arith.constant 0 : index
    %c0_0 = arith.constant 0 : index
    %c0_1 = arith.constant 0 : index
    %0 = vector.load %arg1[%c0, %c0_0, %c0_1] : memref<1x32x256xf32, #tpu.memory_space<vmem>>, vector<1x32x256xf32>
    %cst = arith.constant dense<0.000000e+00> : vector<1x32xf32>
    %1 = vector.multi_reduction <add>, %0, %cst [2] : vector<1x32x256xf32> to vector<1x32xf32>
    %cst_2 = arith.constant 3.906250e-03 : f32
    %2 = vector.broadcast %cst_2 : f32 to vector<1x32xf32>
    %3 = arith.mulf %1, %2 : vector<1x32xf32>
    %cst_3 = arith.constant dense<0xFF800000> : vector<1x32xf32>
    %4 = vector.multi_reduction <maximumf>, %0, %cst_3 [2] : vector<1x32x256xf32> to vector<1x32xf32>
    %5 = tpu.concatenate %3, %4 in 0 : vector<1x32xf32>, vector<1x32xf32> -> vector<2x32xf32>
    %c0_4 = arith.constant 0 : index
    %c0_5 = arith.constant 0 : index
    %6 = vector.load %arg2[%c0_4, %c0_5] : memref<32x2xf32, #tpu.memory_space<vmem>>, vector<32x2xf32>
    %c0_6 = arith.constant 0 : index
    %c0_7 = arith.constant 0 : index
    %7 = vector.load %arg3[%c0_6, %c0_7] : memref<1x2xf32, #tpu.memory_space<vmem>>, vector<1x2xf32>
    %c0_8 = arith.constant 0 : index
    %c0_9 = arith.constant 0 : index
    %8 = vector.load %arg4[%c0_8, %c0_9] : memref<2x32xf32, #tpu.memory_space<vmem>>, vector<2x32xf32>
    %c0_10 = arith.constant 0 : index
    %c0_11 = arith.constant 0 : index
    %9 = vector.load %arg5[%c0_10, %c0_11] : memref<1x32xf32, #tpu.memory_space<vmem>>, vector<1x32xf32>
    %cst_12 = arith.constant dense<0.000000e+00> : vector<2x2xf32>
    %10 = tpu.matmul %5, %6, %cst_12 {dimension_numbers = #tpu.dot_dimension_numbers<[1], [0], [0], [1], [0, 0, 1, 1], [], []>} : vector<2x32xf32>, vector<32x2xf32>, vector<2x2xf32> -> vector<2x2xf32>
    %11 = vector.broadcast %7 : vector<1x2xf32> to vector<2x2xf32>
    %12 = arith.addf %10, %11 : vector<2x2xf32>
    %cst_13 = arith.constant 0.000000e+00 : f32
    %13 = vector.broadcast %cst_13 : f32 to vector<2x2xf32>
    %14 = arith.maximumf %12, %13 : vector<2x2xf32>
    %cst_14 = arith.constant dense<0.000000e+00> : vector<2x32xf32>
    %15 = tpu.matmul %14, %8, %cst_14 {dimension_numbers = #tpu.dot_dimension_numbers<[1], [0], [0], [1], [0, 0, 1, 1], [], []>} : vector<2x2xf32>, vector<2x32xf32>, vector<2x32xf32> -> vector<2x32xf32>
    %16 = vector.broadcast %9 : vector<1x32xf32> to vector<2x32xf32>
    %17 = arith.addf %15, %16 : vector<2x32xf32>
    %18 = vector.extract_strided_slice %17 {offsets = [0, 0], sizes = [1, 32], strides = [1, 1]} : vector<2x32xf32> to vector<1x32xf32>
    %19 = vector.extract_strided_slice %17 {offsets = [1, 0], sizes = [1, 32], strides = [1, 1]} : vector<2x32xf32> to vector<1x32xf32>
    %20 = arith.addf %18, %19 : vector<1x32xf32>
    %21 = arith.negf %20 : vector<1x32xf32>
    %22 = math.exp %21 : vector<1x32xf32>
    %cst_15 = arith.constant 1.000000e+00 : f32
    %23 = vector.broadcast %cst_15 : f32 to vector<1x32xf32>
    %24 = arith.addf %23, %22 : vector<1x32xf32>
    %25 = arith.divf %23, %24 : vector<1x32xf32>
    %26 = vector.shape_cast %25 : vector<1x32xf32> to vector<1x32x1xf32>
    %c0_16 = arith.constant 0 : index
    %c0_17 = arith.constant 0 : index
    %c0_18 = arith.constant 0 : index
    %27 = vector.load %arg1[%c0_16, %c0_17, %c0_18] : memref<1x32x256xf32, #tpu.memory_space<vmem>>, vector<1x32x256xf32>
    %28 = vector.broadcast %26 : vector<1x32x1xf32> to vector<1x32x256xf32>
    %29 = arith.mulf %27, %28 : vector<1x32x256xf32>
    %c0_19 = arith.constant 0 : index
    %c0_20 = arith.constant 0 : index
    %c0_21 = arith.constant 0 : index
    %30 = vector.load %arg6[%c0_19, %c0_20, %c0_21] : memref<1x32x256xf32, #tpu.memory_space<vmem>>, vector<1x32x256xf32>
    tpu.vector_store %arg6[%c0_19, %c0_20, %c0_21], %29 {strides = array<i32>} : memref<1x32x256xf32, #tpu.memory_space<vmem>>, vector<1x32x256xf32>,
    return
  }
  func.func @transform_0(%arg0: i32) -> (i32, i32, i32) {
    %c0_i32 = arith.constant 0 : i32
    %c0_i32_0 = arith.constant 0 : i32
    %c0_i32_1 = arith.constant 0 : i32
    return %arg0, %c0_i32, %c0_i32_0 : i32, i32, i32
  }
  func.func @transform_1(%arg0: i32) -> (i32, i32) {
    %c0_i32 = arith.constant 0 : i32
    %c0_i32_0 = arith.constant 0 : i32
    %c0_i32_1 = arith.constant 0 : i32
    return %c0_i32, %c0_i32_0 : i32, i32
  }
  func.func @transform_2(%arg0: i32) -> (i32, i32) {
    %c0_i32 = arith.constant 0 : i32
    %c0_i32_0 = arith.constant 0 : i32
    %c0_i32_1 = arith.constant 0 : i32
    return %c0_i32, %c0_i32_0 : i32, i32
  }
  func.func @transform_3(%arg0: i32) -> (i32, i32) {
    %c0_i32 = arith.constant 0 : i32
    %c0_i32_0 = arith.constant 0 : i32
    %c0_i32_1 = arith.constant 0 : i32
    return %c0_i32, %c0_i32_0 : i32, i32
  }
  func.func @transform_4(%arg0: i32) -> (i32, i32) {
    %c0_i32 = arith.constant 0 : i32
    %c0_i32_0 = arith.constant 0 : i32
    %c0_i32_1 = arith.constant 0 : i32
    return %c0_i32, %c0_i32_0 : i32, i32
  }
  func.func @transform_5(%arg0: i32) -> (i32, i32, i32) {
    %c0_i32 = arith.constant 0 : i32
    %c0_i32_0 = arith.constant 0 : i32
    %c0_i32_1 = arith.constant 0 : i32
    return %arg0, %c0_i32, %c0_i32_0 : i32, i32, i32
  }
}

</mosaic_0001>

<bundles_post_ra>
// kernel: tpu_custom_call.1
= control target key start
LH: loop header
LB: loop body
LE: loop exit
PB: predicated region body
PF: predicated region fallthrough
CT: control target
= control target key end

     0   :  { %10 = vsyncpa [#allocation3], 0  ;;  %s939_s0 = inlined_call_operand.hbm [shape: f32[2,32,256], index: 0, kind: input, shape index: {}]   ;;  %s940_s1 = inlined_call_operand.vmem [shape: f32[32,2], index: 1, kind: input, shape index: {}]   ;;  %s941_s2 = inlined_call_operand.vmem [shape: f32[1,2], index: 2, kind: input, shape index: {}]   ;;  %s942_s3 = inlined_call_operand.vmem [shape: f32[2,32], index: 3, kind: input, shape index: {}]   ;;  %s943_s4 = inlined_call_operand.vmem [shape: f32[1,32], index: 4, kind: input, shape index: {}]   ;;  %s944_s5 = inlined_call_operand.hbm [shape: f32[2,32,256], index: 5, kind: output, shape index: {}]  }
   0x1   :  { %12 = vsyncpa [#allocation3 + $0x1], 0 }
   0x2   :  { %13 = vsyncpa [#allocation4], 0 }
   0x3   :  { %15 = vsyncpa [#allocation4 + $0x1], 0  ;;  %s747_s18 = smov 0   ;;  %s749_s19 = smov 0  }
   0x4   :  { %s751_s20 = smov 0   ;;  %s753_s21 = smov 0  }
   0x5 LB: > { %s768_s22 = sadd.s32 4294967295, %s711_s21   ;;  %s534_s23 = sadd.s32 4294967294, %s711_s21   ;;  %s711_s21 = sphi %s753_s21, %s954_s21   ;;  %s707_s20 = sphi %s751_s20, %s953_s20   ;;  %s703_s19 = sphi %s749_s19, %s952_s19   ;;  %s699_s18 = sphi %s747_s18, %s951_s18  }
   0x6   : > { %s772_s24 = sadd.s32 1, %s711_s21   ;;  %s28_s25 = sadd.s32 1, %s707_s20 }
   0x7   : > { %s25_s26 = ssub.s32 %s711_s21, %s772_s24  ;;  %p35_p0 = scmp.ne.s32.totalorder %s707_s20, %s703_s19 }
   0x8   : > { %p26_p1 = scmp.eq.s32.totalorder %s25_s26, 0  ;;  %p36_p2 = scmp.eq.s32.totalorder %s711_s21, 0 }
   0x9   : > { %p41_p3 = scmp.ne.s32.totalorder %s703_s19, %s699_s18  ;;  %p42_p4 = scmp.eq.s32.totalorder %s768_s22, 0 }
   0xa   : > { %s784_s27 = scalar_select %p26_p1, %s707_s20, %s28_s25  }
   0xb   : > { %p786_p5 = por %p36_p2, %p35_p0  ;;  %p790_p6 = por %p42_p4, %p41_p3 }
   0xc   : > { %p149_p7 = scmp.eq.s32.totalorder %s768_s22, 1  ;;  %p155_p8 = scmp.eq.s32.totalorder %s534_s23, 1 }
   0xd   : > { %p566_p10 = scmp.lt.s32.totalorder %s711_s21, 2  ;;  %s187_s7 = sand.u32 1, %s707_s20  }
   0xe   : > { %p797_p11 = por %p149_p7, %p35_p0  ;;  %p801_p12 = por %p155_p8, %p41_p3 }
   0xf   : > { %s552_s8 = sshll.u32 %s711_s21, 6  ;;  %s537_s9 = sshll.u32 %s187_s7, 6 }
  0x10   : > { %s196_s12 = scalar_lea.hbm %s939_s0, %s552_s8  ;;  %s191_s14 = scalar_lea.vmem [#allocation2], %s537_s9 }
  0x11   : > { %s197_s13 = sshll.u32 %s196_s12, 4  ;;  %s199_s15 = sshll.u32 %s191_s14, 4  ;;  %s198_s13 = int_to_ptr.hbm [resolvable:$true] %s197_s13  ;;  %s200_s15 = int_to_ptr.vmem [resolvable:$true] %s199_s15 }
  0x12   : > { %p812_p13 = pnand %p566_p10, %p786_p5  ;;  %p540_p0 = scmp.ge.s32.totalorder %s711_s21, 1 }
  0x13   : > { %p207_p1 = scmp.lt.s32.totalorder %s711_s21, 3  ;;  %s188_s17 = scalar_lea.sflag [#allocation3], %s187_s7 }
  0x14   : > { %s615_s23 = sshra.s32 %s198_s13, 4  ;;  %p619_p3 = pneg %p812_p13  ;;  %s616_s23 = int_to_ptr.hbm [resolvable:$true] %s615_s23 }
  0x15   : > { %s617_s25 = scalar_lea.hbm %s616_s23, 64  ;;  %s622_s28 = scalar_lea.hbm %s939_s0, 128 }
  0x16   : > { %p618_p2 = scmp.ne.s32.totalorder %s616_s23, %s617_s25  ;;  %p623_p5 = scmp.lt.s32.totalorder %s616_s23, %s939_s0 }
  0x17   : > { %p624_p8 = scmp.lt.s32.totalorder %s622_s28, %s617_s25 }
  0x18   : > { %p620_p4 = pnand %p619_p3, %p618_p2 }
  0x19   : > { %p625_p10 = por %p624_p8, %p623_p5 }
  0x1a   : > { %p621_p7 = pneg %p620_p4 }
  0x1c   : > { %p626_p9 = pnand %p625_p10, %p621_p7 }
  0x1e   : > { %629 = shalt.err (!%p626_p9)
}
  0x1f   : > { %s713_s7 = smov 256   ;;  %s714_s11 = smov 16  }
  0x20   : > { %561 = dma.hbm_to_vmem [thread:$0]  (!%p812_p13), %s198_s13, 1024, %s200_s15, %s188_s17, %s713_s7, %s713_s7, %s714_s11  }
  0x21   : > { %p208_p2 = pnand %p540_p0, %p207_p1 }
  0x22   : > { %s833_s12 = sand.u32 (!%p208_p2), 1, %s703_s19  }
  0x23   : > { %211 = sbr.rel (%p208_p2) target bundleno = 597 (0x255), region = 40  ;;  %s541_s14 = sshll.u32 (!%p208_p2), %s833_s12, 6 }
  0x24   : > { %s214_s23 = scalar_lea.sflag (!%p208_p2), [#allocation3], %s833_s12  ;;  %s217_s25 = scalar_lea.vmem (!%p208_p2), [#allocation2], %s541_s14 }
  0x28   : > { %690 = dma.done.wait (%p790_p6), %s214_s23, 1024  }
  0x29   : > { %692 = vsyncadd (%p790_p6), %s214_s23, 4294966272  ;;  %v843_v0 = vld [vmem:[%s217_s25] sm:$0xff]  ;;  %v845_v1 = vld [vmem:[%s217_s25 + $0x8] sm:$0xff]  ;;  %v285_v23 = vlaneseq  ;;  %vm290_vm0 = vcmask 130112   ;;  %vm294_vm1 = vcmask 195712   ;;  %vm298_vm2 = vcmask 261312  }
  0x2a   : > { %v847_v2 = vld [vmem:[%s217_s25 + $0x20] sm:$0xff]  ;;  %v269_v3 = vmax.f32 %v843_v0, %v845_v1  ;;  %v253_v4 = vadd.f32 %v845_v1, %v843_v0  ;;  %v853_v5 = vld [vmem:[%s217_s25 + $0x28] sm:$0xff]  ;;  %v857_v7 = vld [vmem:[%s217_s25 + $0x10] sm:$0xff]  ;;  %vm313_vm3 = vcmask 1040384   ;;  %vm325_vm4 = vcmask 261120   ;;  %s244_s29 = scalar_lea.vmem [#allocation5], %s541_s14 }
  0x2b   : > { %v259_v6 = vadd.f32 %v853_v5, %v847_v2  ;;  %v859_v8 = vld [vmem:[%s217_s25 + $0x18] sm:$0xff]  ;;  %v861_v9 = vld [vmem:[%s217_s25 + $0x30] sm:$0xff]  ;;  %v275_v14 = vmax.f32 %v847_v2, %v853_v5  ;;  %v316_v18 = vld [vmem:[%s940_s1 + $0x8] sm:$0xff]  ;;  %v286_v24 = vand.u32 127, %v285_v23  ;;  %vm357_vm5 = vcmask 1041408   ;;  %s553_s13 = sshll.u32 %s768_s22, 6 }
  0x2c   : > { %270 = vmax.xlane.f32.xlu2 %v269_v3  ;;  %254 = vadd.xlane.f32.xlu0 %v253_v4  ;;  %v863_v10 = vld [vmem:[%s217_s25 + $0x38] sm:$0xff]  ;;  %v272_v11 = vmax.f32 %v857_v7, %v859_v8  ;;  %v256_v12 = vadd.f32 %v859_v8, %v857_v7  ;;  %v317_v17 = vld [vmem:[%s940_s1 + $0x10] sm:$0xff]  ;;  %v315_v19 = vld [vmem:[%s940_s1] sm:$0xff]  ;;  %vm353_vm6 = vcmask 15360   ;;  %v406_v57 = vshrl.u32 %v285_v23, 7  ;;  %s457_s17 = scalar_lea.hbm %s944_s5, %s553_s13  ;;  %s458_s26 = sshll.u32 %s244_s29, 4  ;;  %s459_s26 = int_to_ptr.vmem [resolvable:$true] %s458_s26 }
  0x2d   : > { %260 = vadd.xlane.f32.xlu1 %v259_v6  ;;  %v262_v13 = vadd.f32 %v863_v10, %v861_v9  ;;  %v278_v15 = vmax.f32 %v861_v9, %v863_v10  ;;  %v318_v16 = vld [vmem:[%s940_s1 + $0x18] sm:$0xff]  ;;  %v288_v27 = vadd.s32 4294967288, %v286_v24  ;;  %v292_v30 = vadd.s32 4294967280, %v286_v24  ;;  %v320_v52 = vld [vmem:[%s942_s3] sm:$0x3]  ;;  %s460_s8 = sshll.u32 %s457_s17, 4  ;;  %s461_s8 = int_to_ptr.hbm [resolvable:$true] %s460_s8 }
  0x2e   : > { %341 = vmatpush.msra.mxu0 %v318_v16  ;;  %v296_v35 = vadd.s32 4294967272, %v286_v24  ;;  %544 = vmatpush.msk.msra.mxu1 %vm357_vm5, %v320_v52  ;;  %v609_v53 = vld [vmem:[%s941_s2] ss:$0 sm:$0xff]  ;;  %v419_v58 = vadd.s32 16, %v406_v57  ;;  %v413_v59 = vadd.s32 8, %v406_v57  ;;  %v425_v23 = vadd.s32 24, %v406_v57 }
  0x2f   : > { %604 = vset.pattern.permute.xlu2 %v406_v57  ;;  %v610_v60 = vld [vmem:[%s943_s4] ss:$0 sm:$0xff]  ;;  %s446_s22 = scalar_lea.sflag [#allocation4], %s833_s12  ;;  %s659_s14 = sshra.s32 %s461_s8, 4  ;;  %s660_s14 = int_to_ptr.hbm [resolvable:$true] %s659_s14 }
  0x30   : > { %342 = vmatpush.msra.mxu0 %v317_v17  ;;  %606 = vset.pattern.permute.xlu1 %v419_v58  ;;  %s661_s28 = scalar_lea.hbm %s660_s14, 64  ;;  %s665_s7 = scalar_lea.hbm %s944_s5, 128 }
  0x31   : > { %605 = vset.pattern.permute.xlu0 %v413_v59  ;;  %p662_p6 = scmp.ne.s32.totalorder %s660_s14, %s661_s28  ;;  %p666_p0 = scmp.lt.s32.totalorder %s660_s14, %s944_s5 }
  0x32   : > { %343 = vmatpush.msra.mxu0 %v316_v18  ;;  %p667_p1 = scmp.lt.s32.totalorder %s665_s7, %s661_s28 }
  0x33   : > { %p663_p9 = pnand %p662_p6, %p797_p11 }
  0x34   : > { %273 = vmax.xlane.f32.xlu2 %v272_v11  ;;  %257 = vadd.xlane.f32.xlu0 %v256_v12  ;;  %p668_p3 = por %p667_p1, %p666_p0 }
  0x35   : > { %263 = vadd.xlane.f32.xlu1 %v262_v13  ;;  %344 = vmatpush.msra.mxu0 %v315_v19  ;;  %p664_p13 = pneg %p663_p9 }
  0x37   : > { %p669_p4 = pnand %p668_p3, %p664_p13 }
  0x3c   : > { %276 = vmax.xlane.f32.xlu0 %v275_v14 }
  0x3d   : > { %279 = vmax.xlane.f32.xlu1 %v278_v15 }
  0x9f   : > { %v255_v20 = vpop.xlane.xlu0 %254  ;;  %v271_v21 = vpop.xlane.xlu2 %270 }
  0xa0   : > { %v261_v22 = vpop.xlane.xlu1 %260  ;;  %v265_v25 = vmul.f32 0.00390625, %v255_v20  ;;  %v305_v37 = vperm.slane %v271_v21, %v286_v24 }
  0xa1   : > { %v267_v31 = vmul.f32 0.00390625, %v261_v22 }
  0xa2   : > { %v287_v34 = vperm.slane %v265_v25, %v286_v24 }
  0xa3   : > { %v293_v40 = vperm.slane %v267_v31, %v292_v30 }
  0xa7   : > { %v258_v26 = vpop.xlane.xlu0 %257  ;;  %v274_v32 = vpop.xlane.xlu2 %273 }
  0xa8   : > { %v266_v28 = vmul.f32 0.00390625, %v258_v26  ;;  %v264_v29 = vpop.xlane.xlu1 %263  ;;  %v306_v38 = vperm.slane %v274_v32, %v288_v27 }
  0xa9   : > { %v268_v36 = vmul.f32 0.00390625, %v264_v29 }
  0xaa   : > { %v289_v33 = vperm.slane %v266_v28, %v288_v27  ;;  %v307_v46 = vsel %vm290_vm0, %v306_v38, %v305_v37 }
  0xab   : > { %v297_v41 = vperm.slane %v268_v36, %v296_v35 }
  0xac   : > { %v291_v39 = vsel %vm290_vm0, %v289_v33, %v287_v34 }
  0xad   : > { %v295_v45 = vsel %vm294_vm1, %v293_v40, %v291_v39 }
  0xae   : > { %v299_v49 = vsel %vm298_vm2, %v297_v41, %v295_v45 }
  0xaf   : > { %v277_v42 = vpop.xlane.xlu0 %276 }
  0xb0   : > { %v308_v43 = vperm.slane %v277_v42, %v292_v30  ;;  %v280_v44 = vpop.xlane.xlu1 %279 }
  0xb1   : > { %v310_v47 = vperm.slane %v280_v44, %v296_v35 }
  0xb2   : > { %v309_v48 = vsel %vm294_vm1, %v308_v43, %v307_v46 }
  0xb3   : > { %v311_v50 = vsel %vm298_vm2, %v310_v47, %v309_v48 }
  0xb4   : > { %v314_v51 = vsel %vm313_vm3, %v299_v49, %v311_v50 }
  0xb5   : > { %543 = vmatmul.msk.f32.vlgmr.msra.gmra.mxu0 %vm325_vm4, %v314_v51 }
 0x132   : > { %v346_v54 = vpop.f32.mrf.mxu0 }
 0x133   : > { %v347_v55 = vadd.f32 %v609_v53, %v346_v54 }
 0x135   : > { %v349_v56 = vmax.f32 %v347_v55, 0.0 }
 0x137   : > { %545 = vmatmul.msk.f32.vlgmr.msra.gmra.mxu1 %vm353_vm6, %v349_v56 }
 0x1b4   : > { %v378_v61 = vpop.f32.mrf.mxu1 }
 0x1b5   : > { %v379_v62 = vadd.f32 %v610_v60, %v378_v61 }
 0x1b7   : > { %v382_v63 = vrot.slane %v379_v62, 1 }
 0x1b9   : > { %v384_v3 = vadd.f32 %v382_v63, %v379_v62 }
 0x1bb   : > { %v546_v4 = vmul.f32 -1.442695, %v384_v3 }
 0x1bd   : > { %611 = vpow2.f32 %v546_v4 }
 0x1c3   : > { %v612_v6 = vpop.eup %611 }
 0x1c4   : > { %v388_v11 = vadd.f32 1.0, %v612_v6 }
 0x1c6   : > { %613 = vrcp.f32 %v388_v11  ;;  %v400_v15 = vand.u32 2147483648, %v388_v11  ;;  %v398_v17 = vand.u32 2147483647, %v388_v11  ;;  %vm394_vm8 = vweird.f32 %v388_v11 }
 0x1c8   : > { %v401_v19 = vor.u32 1.1754944e-38, %v400_v15  ;;  %vm399_vm10 = vcmp.eq.f32.partialorder %v398_v17, 8.507059e+37 }
 0x1cc   : > { %v614_v12 = vpop.eup %613 }
 0x1cd   : > { %v390_v13 = vmul.f32 %v614_v12, %v388_v11  ;;  %vm395_vm7 = vweird.f32 %v614_v12 }
 0x1ce   : > { %vm396_vm9 = vmor %vm394_vm8, %vm395_vm7 }
 0x1cf   : > { %v391_v14 = vsub.f32 1.0, %v390_v13 }
 0x1d1   : > { %v392_v16 = vmul.f32 %v614_v12, %v391_v14 }
 0x1d3   : > { %v393_v18 = vadd.f32 %v614_v12, %v392_v16 }
 0x1d5   : > { %v397_v20 = vsel %vm396_vm9, %v614_v12, %v393_v18 }
 0x1d6   : > { %v402_v21 = vsel %vm399_vm10, %v401_v19, %v397_v20 }
 0x1d7   : > { %v404_v22 = vperm.slane %v402_v21, 0 }
 0x1d9   : > { %421 = vperm.xlu1 %606, %v404_v22   ;;  %415 = vperm.xlu0 %605, %v404_v22  }
 0x1da   : > { %409 = vperm.xlu2 %604, %v404_v22  }
 0x1e1   : > { %608 = vset.pattern.permute.xlu0 %v425_v23 }
 0x1e2   : > { %607 = vset.pattern.permute.xlu2 %v425_v23 }
 0x1ea   : > { %427 = vperm.xlu2 %607, %v404_v22  }
 0x234   : > { %v410_v24 = vpop.permute.xlu2 %409 }
 0x235   : > { %v429_v25 = vmul.f32 %v410_v24, %v843_v0  ;;  %v430_v26 = vmul.f32 %v410_v24, %v845_v1 }
 0x237   : > { %437 = vst [vmem:[%s244_s29] sm:$0xff] %v429_v25 }
 0x238   : > { %438 = vst [vmem:[%s244_s29 + $0x8] sm:$0xff] %v430_v26 }
 0x244   : > { %v428_v27 = vpop.permute.xlu2 %427 }
 0x245   : > { %v435_v28 = vmul.f32 %v428_v27, %v861_v9  ;;  %v436_v29 = vmul.f32 %v428_v27, %v863_v10 }
 0x247   : > { %443 = vst [vmem:[%s244_s29 + $0x30] sm:$0xff] %v435_v28 }
 0x248   : > { %444 = vst [vmem:[%s244_s29 + $0x38] sm:$0xff] %v436_v29 }
 0x24b   : > { %v422_v0 = vpop.permute.xlu1 %421  ;;  %v416_v1 = vpop.permute.xlu0 %415 }
 0x24c   : > { %v433_v30 = vmul.f32 %v422_v0, %v847_v2  ;;  %v434_v31 = vmul.f32 %v422_v0, %v853_v5  ;;  %v431_v9 = vmul.f32 %v416_v1, %v857_v7  ;;  %v432_v10 = vmul.f32 %v416_v1, %v859_v8 }
 0x24e   : > { %441 = vst [vmem:[%s244_s29 + $0x20] sm:$0xff] %v433_v30 }
 0x24f   : > { %442 = vst [vmem:[%s244_s29 + $0x28] sm:$0xff] %v434_v31 }
 0x250   : > { %439 = vst [vmem:[%s244_s29 + $0x10] sm:$0xff] %v431_v9 }
 0x251   : > { %440 = vst [vmem:[%s244_s29 + $0x18] sm:$0xff] %v432_v10 }
 0x252   : > { %672 = shalt.err (!%p669_p4)
}
 0x253   : > { %s715_s12 = smov 256   ;;  %s716_s25 = smov 16  }
 0x254   : > { %556 = dma.vmem_to_hbm [thread:$0]  (%p797_p11), %s459_s26, 1024, %s461_s8, %s446_s22, %s715_s12, %s715_s12, %s716_s25  }
 0x255 PF: > { %s475_s29 = sand.u32 1, %s699_s18   ;;  %p950_p7 = scmp.ge.s32.totalorder %s711_s21, 2 }
 0x256   : > { %s476_s13 = scalar_lea.sflag [#allocation4], %s475_s29 }
 0x257   : > { %p563_p5 = pnand %p950_p7, %p801_p12 }
 0x259   : > { %p564_p8 = pneg %p563_p5 }
 0x25b   : > { %694 = dma.done.wait (%p564_p8), %s476_s13, 1024  }
 0x25c   : > { %696 = vsyncadd (%p564_p8), %s476_s13, 4294966272  ;;  %p18_p10 = scmp.ge.s32.totalorder %s772_s24, 4   ;;  %s951_s18 = smov %s703_s19 }
 0x25d   : > { %s952_s19 = smov %s707_s20  ;;  %s953_s20 = smov %s784_s27 }
 0x25e   : > { %s954_s21 = smov %s772_s24  ;;  %20 = sbr.rel (!%p18_p10) target bundleno = 5 (0x5), region = 85 }
 0x263   :  { %482 = vsyncpa [#allocation3], 1 }
 0x264   :  { %484 = vsyncpa [#allocation3 + $0x1], 1 }
 0x265   :  { %485 = vsyncpa [#allocation4], 1 }
 0x266   :  { %487 = vsyncpa [#allocation4 + $0x1], 1 }

</bundles_post_ra>
